<compile_context>
chip_gen: v7x
topology: tpu7x:2x2x1
jax: 0.10.0
libtpu: 0.0.40
codegen_flags: <defaults>
</compile_context>

<pallas_src>
import functools
import math

import jax
import jax.numpy as jnp
from jax.experimental import pallas as pl
from jax.experimental.pallas import tpu as pltpu


def _bilinear_matrix(n_in: int, n_out: int) -> jnp.ndarray:
    """Row-interpolation matrix equivalent to torch bilinear, align_corners=False."""
    scale = n_in / n_out
    out_idx = jnp.arange(n_out, dtype=jnp.float32)
    src = (out_idx + 0.5) * scale - 0.5
    src = jnp.clip(src, 0.0, float(n_in - 1))
    lo = jnp.floor(src).astype(jnp.int32)
    hi = jnp.minimum(lo + 1, n_in - 1)
    w_hi = src - lo.astype(jnp.float32)
    w_lo = 1.0 - w_hi
    rows = jnp.arange(n_out)
    mat = jnp.zeros((n_out, n_in), jnp.float32)
    mat = mat.at[rows, lo].add(w_lo)
    mat = mat.at[rows, hi].add(w_hi)
    return mat


def _round_up(x: int, m: int) -> int:
    return (x + m - 1) // m * m


def _padded_bytes(rows: int, cols: int, itemsize: int) -> int:
    """VMEM footprint of a 2-D buffer with (8, 128) vreg padding."""
    return _round_up(rows, 8) * _round_up(cols, 128) * itemsize


def _vmem_estimate(tn, H, Ho, W, Wo, op_itemsize) -> int:
    """Conservative padded-VMEM estimate for one grid step (double-buffered)."""
    field = 2 * 2 * _padded_bytes(tn * H, W, 4)            # fr, fi blocks (x2 buf)
    outs = 2 * 2 * _padded_bytes(tn * Ho, Wo, 4)           # re/im output blocks
    maskb = 2 * 2 * _padded_bytes(tn * H, W, 4)            # packed mask (worst case x2 buf)
    mats = 2 * (_padded_bytes(W, Wo, op_itemsize)
                + _padded_bytes(tn * Ho, tn * H, op_itemsize))
    interm = 6 * _padded_bytes(tn * max(H, Ho), max(W, Wo), 4)
    return field + outs + maskb + mats + interm


def _pick_block_n(N, H, Ho, W, Wo, cap, op_itemsize, vmem_budget, prefer_steps) -> int:
    """Planes-per-grid-step: sublane-legal, VMEM-bounded, and Nb >= prefer_steps
    (>= 4 by default so both v7x TensorCores get >= 2 pipelined steps)."""
    legal = [d for d in range(1, N + 1)
             if N % d == 0 and (d == N or ((d * H) % 8 == 0 and (d * Ho) % 8 == 0))]
    fit = [d for d in legal if _vmem_estimate(d, H, Ho, W, Wo, op_itemsize) <= vmem_budget]
    fit = fit or [min(legal)]
    capped = [d for d in fit if d <= cap] or [min(fit)]
    for target in (prefer_steps, 2, 1):
        ok = [d for d in capped if N // d >= target]
        if ok:
            return max(ok)
    return max(capped)


def _mask_interp_kernel(fr_ref, fi_ref, m_ref, aw_ref, ah_ref, or_ref, oi_ref, *,
                        op_dtype, use_kron, rows_first, tn, h, ho):
    # fr/fi blocks: (TN*H, W) f32 -- TN planes stacked along sublanes (natural layout).
    fr = fr_ref[...]
    fi = fi_ref[...]
    mr = m_ref[0]                         # (TN*H, W) mask real (tiled per plane)
    mi = m_ref[1]                         # (TN*H, W) mask imag
    # complex elementwise multiply in f32 on the VPU (v5e has no bf16 VALU)
    xr = (fr * mr - fi * mi).astype(op_dtype)
    xi = (fr * mi + fi * mr).astype(op_dtype)
    aw = aw_ref[...]                      # (W, Wo)   shared column-interp matrix
    ah = ah_ref[...]                      # kron(I_TN, A_h) (TN*Ho, TN*H) or A_h (Ho, H)

    def col_interp(z):                    # (*, W) @ (W, Wo) -> (*, Wo), f32 accumulate
        return jnp.dot(z, aw, preferred_element_type=jnp.float32)

    def row_interp_kron(z):               # (TN*Ho, TN*H) @ (TN*H, *) -> (TN*Ho, *)
        return jnp.dot(ah, z, preferred_element_type=jnp.float32)

    if use_kron:
        # Tiny H/W: one block-diagonal matmul keeps the MXU columns occupied.
        if rows_first:
            or_ref[...] = col_interp(row_interp_kron(xr).astype(op_dtype))
            oi_ref[...] = col_interp(row_interp_kron(xi).astype(op_dtype))
        else:
            or_ref[...] = row_interp_kron(col_interp(xr).astype(op_dtype))
            oi_ref[...] = row_interp_kron(col_interp(xi).astype(op_dtype))
    else:
        # Large H/W: shared (W, Wo) column interp once, then per-plane (Ho, H)
        # row interp -- no kron zero blocks (TN x fewer MXU MACs).
        yr = col_interp(xr).astype(op_dtype)      # (TN*H, Wo)
        yi = col_interp(xi).astype(op_dtype)
        for t in range(tn):                       # static unroll
            src = slice(t * h, (t + 1) * h)
            dst = slice(t * ho, (t + 1) * ho)
            or_ref[dst, :] = jnp.dot(ah, yr[src, :], preferred_element_type=jnp.float32)
            oi_ref[dst, :] = jnp.dot(ah, yi[src, :], preferred_element_type=jnp.float32)


def abstract_mask_forward(field, mask, pixels_out, pad_xy, *,
                          block_n: int = 8, use_bf16_matmul: bool = True,
                          prefer_grid_steps: int = 4):
    """
    field: (B, C, H, W) complex64  (NCHW, like the PyTorch module)
    mask:  (Hp, Wp) complex64 with Hp = H + 2*pad_y, Wp = W + 2*pad_x
    pixels_out: (Ho, Wo) target size for bilinear interpolation
               (NOTE: module passes (pixels.output.x, pixels.output.y); mapped
                to (rows, cols) like the previous implementation; only square
                outputs are validated here)
    pad_xy: (pad_x, pad_y) == self._paddings_difference halves (>= 0 by construction)
    """
    pad_x, pad_y = pad_xy
    assert pad_x >= 0 and pad_y >= 0, "_paddings_difference is non-negative by construction"
    B, C, H, W = field.shape
    Ho, Wo = pixels_out
    Hp, Wp = H + 2 * pad_y, W + 2 * pad_x
    assert mask.shape == (Hp, Wp)

    N = B * C
    op_dtype = jnp.bfloat16 if use_bf16_matmul else jnp.float32
    op_itemsize = 2 if use_bf16_matmul else 4

    # VMEM budget derived for the tightest generation (v7x: 64 MiB physical).
    TN = _pick_block_n(N, H, Ho, W, Wo, block_n, op_itemsize,
                       vmem_budget=24 * 1024 * 1024, prefer_steps=prefer_grid_steps)
    Nb = N // TN

    # Pad elision: torch pads with zeros *before* the mask multiply, so padded
    # rows/cols contribute nothing to the bilinear sums -> slice the interp
    # matrices to the interior columns and skip the pad pass entirely.
    a_h = _bilinear_matrix(Hp, Ho)[:, pad_y:pad_y + H]                 # (Ho, H)
    a_wT = _bilinear_matrix(Wp, Wo)[:, pad_x:pad_x + W].T              # (W, Wo)

    # Row-interp formulation + matmul order picked at trace time by MAC count.
    use_kron = (TN == 1) or (H < 128) or (min(W, Wo) < 128)
    if use_kron:
        macs_rows_first = TN * TN * Ho * H * W + TN * Ho * W * Wo
        macs_cols_first = TN * H * W * Wo + TN * TN * Ho * H * Wo
        rows_first = macs_rows_first <= macs_cols_first
        macs = min(macs_rows_first, macs_cols_first)
        ah_mat = jnp.kron(jnp.eye(TN, dtype=jnp.float32), a_h)         # (TN*Ho, TN*H)
    else:
        rows_first = False
        macs = TN * H * W * Wo + TN * Ho * H * Wo
        ah_mat = a_h                                                   # (Ho, H)
    ah_mat = ah_mat.astype(op_dtype)
    aw_mat = a_wT.astype(op_dtype)

    # Field stays in natural layout: real/imag extraction is the only host pass;
    # the reshape to (N*H, W) is contiguous (free) and the TN-plane packing is
    # done by the BlockSpec index_map along sublanes (no transposes, no re-pack).
    fr = jnp.real(field).astype(jnp.float32).reshape(N * H, W)
    fi = jnp.imag(field).astype(jnp.float32).reshape(N * H, W)

    # Mask interior, packed re/im into ONE grid-invariant stream and tiled along
    # sublanes for the TN planes of a block (tiny: 2*TN*H*W*4 bytes, read once).
    m_in = mask[pad_y:pad_y + H, pad_x:pad_x + W]
    m2 = jnp.tile(jnp.stack([jnp.real(m_in), jnp.imag(m_in)]).astype(jnp.float32),
                  (1, TN, 1))                                          # (2, TN*H, W)

    kernel = functools.partial(_mask_interp_kernel, op_dtype=op_dtype,
                               use_kron=use_kron, rows_first=rows_first,
                               tn=TN, h=H, ho=Ho)

    flops = Nb * (2 * 2 * macs + 8 * TN * H * W)
    bytes_accessed = (4 * (int(fr.size) + int(fi.size) + int(m2.size) + 2 * N * Ho * Wo)
                      + op_itemsize * (int(aw_mat.size) + int(ah_mat.size)))
    vmem_limit = int(min(48 * 1024 * 1024,
                         max(16 * 1024 * 1024,
                             4 * _vmem_estimate(TN, H, Ho, W, Wo, op_itemsize))))

    out_shapes = (jax.ShapeDtypeStruct((N * Ho, Wo), jnp.float32),
                  jax.ShapeDtypeStruct((N * Ho, Wo), jnp.float32))

    def _build(use_buffer_hint):
        def invariant(shape):
            imap = lambda n: (0,) * len(shape)
            if use_buffer_hint:
                # grid-invariant operands: single-buffered -> half the VMEM residency
                return pl.BlockSpec(shape, imap, pipeline_mode=pl.Buffered(1))
            return pl.BlockSpec(shape, imap)

        grid_spec = pltpu.PrefetchScalarGridSpec(
            num_scalar_prefetch=0,
            grid=(Nb,),
            in_specs=[
                pl.BlockSpec((TN * H, W), lambda n: (n, 0)),           # field real
                pl.BlockSpec((TN * H, W), lambda n: (n, 0)),           # field imag
                invariant((2, TN * H, W)),                             # packed mask
                invariant((W, Wo)),                                    # column interp
                invariant(tuple(ah_mat.shape)),                        # row interp
            ],
            out_specs=[
                pl.BlockSpec((TN * Ho, Wo), lambda n: (n, 0)),
                pl.BlockSpec((TN * Ho, Wo), lambda n: (n, 0)),
            ],
        )
        return pl.pallas_call(
            kernel,
            out_shape=out_shapes,
            grid_spec=grid_spec,
            compiler_params=pltpu.CompilerParams(
                dimension_semantics=("parallel",),
                vmem_limit_bytes=vmem_limit),
            cost_estimate=pl.CostEstimate(
                flops=int(flops), transcendentals=0,
                bytes_accessed=int(bytes_accessed)),
        )

    try:
        out_r, out_i = _build(True)(fr, fi, m2, aw_mat, ah_mat)
    except Exception:
        # pipeline_mode hint is advisory; fall back if this JAX build rejects
        # Buffered(1) on a pallas_call BlockSpec.
        out_r, out_i = _build(False)(fr, fi, m2, aw_mat, ah_mat)

    # Single pass to rebuild complex64; the reshape back to NCHW is contiguous (free).
    out = jax.lax.complex(out_r, out_i)
    return out.reshape(B, C, Ho, Wo)


if __name__ == "__main__":
    # Module geometry (deterministic, derived exactly as AbstractElement does):
    #   pixels.input = 16, pixels.output = 32
    #   length.input = 1.0, length.output = 1.5
    # add_pixels = ceil(round((1.5-1.0)*16/1.0)/2) = 4  (positive -> padding)
    # paddings_difference = (4,4,4,4); mask buffer size = 16 + 2*4 = 24
    px_in = 16
    px_out = 32
    add = math.ceil(round((1.5 - 1.0) * px_in / 1.0) / 2)   # = 4
    Hp = px_in + 2 * add                                    # = 24

    # TODO(synk): delayed.launch() / accuracy / logger bookkeeping has no tensor
    # compute; it is omitted (mask buffer is built deterministically here instead
    # of the abstract _recalc_mask_buffer).

    B, C = 2, 4
    key = jax.random.PRNGKey(0)
    kr, ki = jax.random.split(key)
    field = (jax.random.normal(kr, (B, C, px_in, px_in), jnp.float32)
             + 1j * jax.random.normal(ki, (B, C, px_in, px_in), jnp.float32)
             ).astype(jnp.complex64)

    # Deterministic complex phase mask standing in for _mask_buffer (Fresnel-like).
    yy, xx = jnp.meshgrid(jnp.linspace(-1.0, 1.0, Hp),
                          jnp.linspace(-1.0, 1.0, Hp), indexing="ij")
    phase = 2.0 * jnp.pi * (xx ** 2 + yy ** 2)
    mask = (jnp.cos(phase) + 1j * jnp.sin(phase)).astype(jnp.complex64)

    # Default path: bf16 MXU operands, f32 accumulation (all TPU generations).
    out_bf16 = jax.block_until_ready(
        abstract_mask_forward(field, mask, (px_out, px_out), (add, add)))
    # Exact path: f32 matmul operands.
    out_f32 = jax.block_until_ready(
        abstract_mask_forward(field, mask, (px_out, px_out), (add, add),
                              use_bf16_matmul=False))
    assert out_bf16.shape == (B, C, px_out, px_out) and out_bf16.dtype == jnp.complex64
    assert out_f32.shape == (B, C, px_out, px_out) and out_f32.dtype == jnp.complex64

    # Reference: explicit pad -> complex mask multiply -> same bilinear matrices.
    padded = jnp.pad(field, ((0, 0), (0, 0), (add, add), (add, add)))
    masked = padded * mask
    ah_full = _bilinear_matrix(Hp, px_out)
    aw_full = _bilinear_matrix(Hp, px_out)
    ref = jnp.einsum('oh,bchw,vw->bcov', ah_full, masked, aw_full,
                     precision="highest")
    assert jnp.allclose(out_f32, ref, atol=1e-3, rtol=1e-3)
    # bf16 operands / f32 accumulation: looser tolerance (double rounding of the
    # intermediate between the two matmuls, as flagged in the review).
    assert jnp.allclose(out_bf16, ref, atol=1e-1, rtol=2e-2)

    print("KERNEL_OK")
</pallas_src>

<mosaic_0001>
module attributes {stable_mosaic.version = 11 : i64} {
  func.func @_mask_interp_kernel(%arg0: i32, %arg1: memref<32x16xf32, #tpu.memory_space<vmem>>, %arg2: memref<32x16xf32, #tpu.memory_space<vmem>>, %arg3: memref<2x32x16xf32, #tpu.memory_space<vmem>>, %arg4: memref<16x32xbf16, #tpu.memory_space<vmem>>, %arg5: memref<64x32xbf16, #tpu.memory_space<vmem>>, %arg6: memref<64x32xf32, #tpu.memory_space<vmem>>, %arg7: memref<64x32xf32, #tpu.memory_space<vmem>>) attributes {dimension_semantics = [#tpu.dimension_semantics<parallel>], iteration_bounds = array<i64: 4>, scalar_prefetch = 0 : i64, scratch_operands = 0 : i64, tpu.core_type = #tpu.core_type<tc>, window_params = [{transform_indices = @transform_0, window_bounds = array<i64: 32, 16>}, {transform_indices = @transform_1, window_bounds = array<i64: 32, 16>}, {pipeline_mode = #tpu.pipeline_mode<synchronous>, transform_indices = @transform_2, window_bounds = array<i64: 2, 32, 16>}, {pipeline_mode = #tpu.pipeline_mode<synchronous>, transform_indices = @transform_3, window_bounds = array<i64: 16, 32>}, {pipeline_mode = #tpu.pipeline_mode<synchronous>, transform_indices = @transform_4, window_bounds = array<i64: 64, 32>}, {transform_indices = @transform_5, window_bounds = array<i64: 64, 32>}, {transform_indices = @transform_6, window_bounds = array<i64: 64, 32>}]} {
    %c0 = arith.constant 0 : index
    %c0_0 = arith.constant 0 : index
    %0 = vector.load %arg1[%c0, %c0_0] : memref<32x16xf32, #tpu.memory_space<vmem>>, vector<32x16xf32>
    %c0_1 = arith.constant 0 : index
    %c0_2 = arith.constant 0 : index
    %1 = vector.load %arg2[%c0_1, %c0_2] : memref<32x16xf32, #tpu.memory_space<vmem>>, vector<32x16xf32>
    %c0_3 = arith.constant 0 : index
    %c0_4 = arith.constant 0 : index
    %c0_5 = arith.constant 0 : index
    %2 = vector.load %arg3[%c0_3, %c0_4, %c0_5] : memref<2x32x16xf32, #tpu.memory_space<vmem>>, vector<1x32x16xf32>
    %3 = vector.shape_cast %2 : vector<1x32x16xf32> to vector<32x16xf32>
    %c1 = arith.constant 1 : index
    %c0_6 = arith.constant 0 : index
    %c0_7 = arith.constant 0 : index
    %4 = vector.load %arg3[%c1, %c0_6, %c0_7] : memref<2x32x16xf32, #tpu.memory_space<vmem>>, vector<1x32x16xf32>
    %5 = vector.shape_cast %4 : vector<1x32x16xf32> to vector<32x16xf32>
    %6 = arith.mulf %0, %3 : vector<32x16xf32>
    %7 = arith.mulf %1, %5 : vector<32x16xf32>
    %8 = arith.subf %6, %7 : vector<32x16xf32>
    %9 = arith.truncf %8 : vector<32x16xf32> to vector<32x16xbf16>
    %10 = arith.mulf %0, %5 : vector<32x16xf32>
    %11 = arith.mulf %1, %3 : vector<32x16xf32>
    %12 = arith.addf %10, %11 : vector<32x16xf32>
    %13 = arith.truncf %12 : vector<32x16xf32> to vector<32x16xbf16>
    %c0_8 = arith.constant 0 : index
    %c0_9 = arith.constant 0 : index
    %14 = vector.load %arg4[%c0_8, %c0_9] : memref<16x32xbf16, #tpu.memory_space<vmem>>, vector<16x32xbf16>
    %c0_10 = arith.constant 0 : index
    %c0_11 = arith.constant 0 : index
    %15 = vector.load %arg5[%c0_10, %c0_11] : memref<64x32xbf16, #tpu.memory_space<vmem>>, vector<64x32xbf16>
    %cst = arith.constant dense<0.000000e+00> : vector<64x16xf32>
    %16 = tpu.matmul %15, %9, %cst {dimension_numbers = #tpu.dot_dimension_numbers<[1], [0], [0], [1], [0, 0, 1, 1], [], []>} : vector<64x32xbf16>, vector<32x16xbf16>, vector<64x16xf32> -> vector<64x16xf32>
    %17 = arith.truncf %16 : vector<64x16xf32> to vector<64x16xbf16>
    %cst_12 = arith.constant dense<0.000000e+00> : vector<64x32xf32>
    %18 = tpu.matmul %17, %14, %cst_12 {dimension_numbers = #tpu.dot_dimension_numbers<[1], [0], [0], [1], [0, 0, 1, 1], [], []>} : vector<64x16xbf16>, vector<16x32xbf16>, vector<64x32xf32> -> vector<64x32xf32>
    %c0_13 = arith.constant 0 : index
    %c0_14 = arith.constant 0 : index
    %19 = vector.load %arg6[%c0_13, %c0_14] : memref<64x32xf32, #tpu.memory_space<vmem>>, vector<64x32xf32>
    tpu.vector_store %arg6[%c0_13, %c0_14], %18 {strides = array<i32>} : memref<64x32xf32, #tpu.memory_space<vmem>>, vector<64x32xf32>,
    %cst_15 = arith.constant dense<0.000000e+00> : vector<64x16xf32>
    %20 = tpu.matmul %15, %13, %cst_15 {dimension_numbers = #tpu.dot_dimension_numbers<[1], [0], [0], [1], [0, 0, 1, 1], [], []>} : vector<64x32xbf16>, vector<32x16xbf16>, vector<64x16xf32> -> vector<64x16xf32>
    %21 = arith.truncf %20 : vector<64x16xf32> to vector<64x16xbf16>
    %cst_16 = arith.constant dense<0.000000e+00> : vector<64x32xf32>
    %22 = tpu.matmul %21, %14, %cst_16 {dimension_numbers = #tpu.dot_dimension_numbers<[1], [0], [0], [1], [0, 0, 1, 1], [], []>} : vector<64x16xbf16>, vector<16x32xbf16>, vector<64x32xf32> -> vector<64x32xf32>
    %c0_17 = arith.constant 0 : index
    %c0_18 = arith.constant 0 : index
    %23 = vector.load %arg7[%c0_17, %c0_18] : memref<64x32xf32, #tpu.memory_space<vmem>>, vector<64x32xf32>
    tpu.vector_store %arg7[%c0_17, %c0_18], %22 {strides = array<i32>} : memref<64x32xf32, #tpu.memory_space<vmem>>, vector<64x32xf32>,
    return
  }
  func.func @transform_0(%arg0: i32) -> (i32, i32) {
    %c0_i32 = arith.constant 0 : i32
    %c0_i32_0 = arith.constant 0 : i32
    return %arg0, %c0_i32 : i32, i32
  }
  func.func @transform_1(%arg0: i32) -> (i32, i32) {
    %c0_i32 = arith.constant 0 : i32
    %c0_i32_0 = arith.constant 0 : i32
    return %arg0, %c0_i32 : i32, i32
  }
  func.func @transform_2(%arg0: i32) -> (i32, i32, i32) {
    %c0_i32 = arith.constant 0 : i32
    %c0_i32_0 = arith.constant 0 : i32
    %c0_i32_1 = arith.constant 0 : i32
    %c0_i32_2 = arith.constant 0 : i32
    return %c0_i32, %c0_i32_0, %c0_i32_1 : i32, i32, i32
  }
  func.func @transform_3(%arg0: i32) -> (i32, i32) {
    %c0_i32 = arith.constant 0 : i32
    %c0_i32_0 = arith.constant 0 : i32
    %c0_i32_1 = arith.constant 0 : i32
    return %c0_i32, %c0_i32_0 : i32, i32
  }
  func.func @transform_4(%arg0: i32) -> (i32, i32) {
    %c0_i32 = arith.constant 0 : i32
    %c0_i32_0 = arith.constant 0 : i32
    %c0_i32_1 = arith.constant 0 : i32
    return %c0_i32, %c0_i32_0 : i32, i32
  }
  func.func @transform_5(%arg0: i32) -> (i32, i32) {
    %c0_i32 = arith.constant 0 : i32
    %c0_i32_0 = arith.constant 0 : i32
    return %arg0, %c0_i32 : i32, i32
  }
  func.func @transform_6(%arg0: i32) -> (i32, i32) {
    %c0_i32 = arith.constant 0 : i32
    %c0_i32_0 = arith.constant 0 : i32
    return %arg0, %c0_i32 : i32, i32
  }
}

module attributes {stable_mosaic.version = 11 : i64} {
  func.func @_mask_interp_kernel(%arg0: i32, %arg1: memref<32x16xf32, #tpu.memory_space<vmem>>, %arg2: memref<32x16xf32, #tpu.memory_space<vmem>>, %arg3: memref<2x32x16xf32, #tpu.memory_space<vmem>>, %arg4: memref<16x32xbf16, #tpu.memory_space<vmem>>, %arg5: memref<64x32xbf16, #tpu.memory_space<vmem>>, %arg6: memref<64x32xf32, #tpu.memory_space<vmem>>, %arg7: memref<64x32xf32, #tpu.memory_space<vmem>>) attributes {dimension_semantics = [#tpu.dimension_semantics<parallel>], iteration_bounds = array<i64: 4>, scalar_prefetch = 0 : i64, scratch_operands = 0 : i64, tpu.core_type = #tpu.core_type<tc>, window_params = [{transform_indices = @transform_0, window_bounds = array<i64: 32, 16>}, {transform_indices = @transform_1, window_bounds = array<i64: 32, 16>}, {pipeline_mode = #tpu.pipeline_mode<synchronous>, transform_indices = @transform_2, window_bounds = array<i64: 2, 32, 16>}, {pipeline_mode = #tpu.pipeline_mode<synchronous>, transform_indices = @transform_3, window_bounds = array<i64: 16, 32>}, {pipeline_mode = #tpu.pipeline_mode<synchronous>, transform_indices = @transform_4, window_bounds = array<i64: 64, 32>}, {transform_indices = @transform_5, window_bounds = array<i64: 64, 32>}, {transform_indices = @transform_6, window_bounds = array<i64: 64, 32>}]} {
    %c0 = arith.constant 0 : index
    %c0_0 = arith.constant 0 : index
    %0 = vector.load %arg1[%c0, %c0_0] : memref<32x16xf32, #tpu.memory_space<vmem>>, vector<32x16xf32>
    %c0_1 = arith.constant 0 : index
    %c0_2 = arith.constant 0 : index
    %1 = vector.load %arg2[%c0_1, %c0_2] : memref<32x16xf32, #tpu.memory_space<vmem>>, vector<32x16xf32>
    %c0_3 = arith.constant 0 : index
    %c0_4 = arith.constant 0 : index
    %c0_5 = arith.constant 0 : index
    %2 = vector.load %arg3[%c0_3, %c0_4, %c0_5] : memref<2x32x16xf32, #tpu.memory_space<vmem>>, vector<1x32x16xf32>
    %3 = vector.shape_cast %2 : vector<1x32x16xf32> to vector<32x16xf32>
    %c1 = arith.constant 1 : index
    %c0_6 = arith.constant 0 : index
    %c0_7 = arith.constant 0 : index
    %4 = vector.load %arg3[%c1, %c0_6, %c0_7] : memref<2x32x16xf32, #tpu.memory_space<vmem>>, vector<1x32x16xf32>
    %5 = vector.shape_cast %4 : vector<1x32x16xf32> to vector<32x16xf32>
    %6 = arith.mulf %0, %3 : vector<32x16xf32>
    %7 = arith.mulf %1, %5 : vector<32x16xf32>
    %8 = arith.subf %6, %7 : vector<32x16xf32>
    %9 = arith.truncf %8 : vector<32x16xf32> to vector<32x16xbf16>
    %10 = arith.mulf %0, %5 : vector<32x16xf32>
    %11 = arith.mulf %1, %3 : vector<32x16xf32>
    %12 = arith.addf %10, %11 : vector<32x16xf32>
    %13 = arith.truncf %12 : vector<32x16xf32> to vector<32x16xbf16>
    %c0_8 = arith.constant 0 : index
    %c0_9 = arith.constant 0 : index
    %14 = vector.load %arg4[%c0_8, %c0_9] : memref<16x32xbf16, #tpu.memory_space<vmem>>, vector<16x32xbf16>
    %c0_10 = arith.constant 0 : index
    %c0_11 = arith.constant 0 : index
    %15 = vector.load %arg5[%c0_10, %c0_11] : memref<64x32xbf16, #tpu.memory_space<vmem>>, vector<64x32xbf16>
    %cst = arith.constant dense<0.000000e+00> : vector<64x16xf32>
    %16 = tpu.matmul %15, %9, %cst {dimension_numbers = #tpu.dot_dimension_numbers<[1], [0], [0], [1], [0, 0, 1, 1], [], []>} : vector<64x32xbf16>, vector<32x16xbf16>, vector<64x16xf32> -> vector<64x16xf32>
    %17 = arith.truncf %16 : vector<64x16xf32> to vector<64x16xbf16>
    %cst_12 = arith.constant dense<0.000000e+00> : vector<64x32xf32>
    %18 = tpu.matmul %17, %14, %cst_12 {dimension_numbers = #tpu.dot_dimension_numbers<[1], [0], [0], [1], [0, 0, 1, 1], [], []>} : vector<64x16xbf16>, vector<16x32xbf16>, vector<64x32xf32> -> vector<64x32xf32>
    %c0_13 = arith.constant 0 : index
    %c0_14 = arith.constant 0 : index
    %19 = vector.load %arg6[%c0_13, %c0_14] : memref<64x32xf32, #tpu.memory_space<vmem>>, vector<64x32xf32>
    tpu.vector_store %arg6[%c0_13, %c0_14], %18 {strides = array<i32>} : memref<64x32xf32, #tpu.memory_space<vmem>>, vector<64x32xf32>,
    %cst_15 = arith.constant dense<0.000000e+00> : vector<64x16xf32>
    %20 = tpu.matmul %15, %13, %cst_15 {dimension_numbers = #tpu.dot_dimension_numbers<[1], [0], [0], [1], [0, 0, 1, 1], [], []>} : vector<64x32xbf16>, vector<32x16xbf16>, vector<64x16xf32> -> vector<64x16xf32>
    %21 = arith.truncf %20 : vector<64x16xf32> to vector<64x16xbf16>
    %cst_16 = arith.constant dense<0.000000e+00> : vector<64x32xf32>
    %22 = tpu.matmul %21, %14, %cst_16 {dimension_numbers = #tpu.dot_dimension_numbers<[1], [0], [0], [1], [0, 0, 1, 1], [], []>} : vector<64x16xbf16>, vector<16x32xbf16>, vector<64x32xf32> -> vector<64x32xf32>
    %c0_17 = arith.constant 0 : index
    %c0_18 = arith.constant 0 : index
    %23 = vector.load %arg7[%c0_17, %c0_18] : memref<64x32xf32, #tpu.memory_space<vmem>>, vector<64x32xf32>
    tpu.vector_store %arg7[%c0_17, %c0_18], %22 {strides = array<i32>} : memref<64x32xf32, #tpu.memory_space<vmem>>, vector<64x32xf32>,
    return
  }
  func.func @transform_0(%arg0: i32) -> (i32, i32) {
    %c0_i32 = arith.constant 0 : i32
    %c0_i32_0 = arith.constant 0 : i32
    return %arg0, %c0_i32 : i32, i32
  }
  func.func @transform_1(%arg0: i32) -> (i32, i32) {
    %c0_i32 = arith.constant 0 : i32
    %c0_i32_0 = arith.constant 0 : i32
    return %arg0, %c0_i32 : i32, i32
  }
  func.func @transform_2(%arg0: i32) -> (i32, i32, i32) {
    %c0_i32 = arith.constant 0 : i32
    %c0_i32_0 = arith.constant 0 : i32
    %c0_i32_1 = arith.constant 0 : i32
    %c0_i32_2 = arith.constant 0 : i32
    return %c0_i32, %c0_i32_0, %c0_i32_1 : i32, i32, i32
  }
  func.func @transform_3(%arg0: i32) -> (i32, i32) {
    %c0_i32 = arith.constant 0 : i32
    %c0_i32_0 = arith.constant 0 : i32
    %c0_i32_1 = arith.constant 0 : i32
    return %c0_i32, %c0_i32_0 : i32, i32
  }
  func.func @transform_4(%arg0: i32) -> (i32, i32) {
    %c0_i32 = arith.constant 0 : i32
    %c0_i32_0 = arith.constant 0 : i32
    %c0_i32_1 = arith.constant 0 : i32
    return %c0_i32, %c0_i32_0 : i32, i32
  }
  func.func @transform_5(%arg0: i32) -> (i32, i32) {
    %c0_i32 = arith.constant 0 : i32
    %c0_i32_0 = arith.constant 0 : i32
    return %arg0, %c0_i32 : i32, i32
  }
  func.func @transform_6(%arg0: i32) -> (i32, i32) {
    %c0_i32 = arith.constant 0 : i32
    %c0_i32_0 = arith.constant 0 : i32
    return %arg0, %c0_i32 : i32, i32
  }
}

</mosaic_0001>

<bundles_post_ra>
// kernel: tpu_custom_call.1
= control target key start
LH: loop header
LB: loop body
LE: loop exit
PB: predicated region body
PF: predicated region fallthrough
CT: control target
= control target key end

     0   :  { %s959_s21 = smov 0   ;;  %s1068_s0 = inlined_call_operand.vmem [shape: f32[128,16], index: 0, kind: input, shape index: {}]   ;;  %s1069_s1 = inlined_call_operand.vmem [shape: f32[128,16], index: 1, kind: input, shape index: {}]   ;;  %s1070_s2 = inlined_call_operand.vmem [shape: f32[2,32,16], index: 2, kind: input, shape index: {}]   ;;  %s1071_s3 = inlined_call_operand.vmem [shape: bf16[16,32], index: 3, kind: input, shape index: {}]   ;;  %s1072_s4 = inlined_call_operand.vmem [shape: bf16[64,32], index: 4, kind: input, shape index: {}]   ;;  %s1073_s5 = inlined_call_operand.vmem [shape: f32[256,32], index: 5, kind: output, shape index: {0}]   ;;  %s1074_s6 = inlined_call_operand.vmem [shape: f32[256,32], index: 6, kind: output, shape index: {1}]  }
   0x1 LB: > { %s797_s22 = sadd.s32 4294967295, %s922_s21   ;;  %p801_p0 = scmp.ge.s32.totalorder %s922_s21, 1  ;;  %s922_s21 = sphi %s959_s21, %s17_s21  }
   0x2   : > { %p227_p1 = scmp.lt.s32.totalorder %s922_s21, 5 }
   0x4   : > { %p228_p2 = pnand %p801_p0, %p227_p1 }
   0x5   : > { %s802_s23 = sshll.u32 (!%p228_p2), %s797_s22, 2  ;;  %vm367_vm0 = vcmask (!%p228_p2), 261120   ;;  %v300_v0 = vld [vmem:[%s1070_s2] sm:$0xff] (!%p228_p2)  ;;  %v301_v1 = vld [vmem:[%s1070_s2 + $0x8] sm:$0xff] (!%p228_p2)  ;;  %v302_v5 = vld [vmem:[%s1070_s2 + $0x10] sm:$0xff] (!%p228_p2)  ;;  %vm455_vm1 = vcmask (!%p228_p2), 130048  }
   0x6   : > { %231 = sbr.rel (%p228_p2) target bundleno = 708 (0x2c4), region = 40  ;;  %p268_p3 = scmp.lt.s32.totalorder (!%p228_p2), %s802_s23, 15  ;;  %v810_v2 = vld [vmem:[%s1070_s2 + $0x20] sm:$0xff] (!%p228_p2)  ;;  %v811_v4 = vld [vmem:[%s1070_s2 + $0x28] sm:$0xff] (!%p228_p2)  ;;  %v303_v6 = vld [vmem:[%s1070_s2 + $0x18] sm:$0xff] (!%p228_p2) }
   0x7   : > { %v981_v3 = vld [vmem:[%s1072_s4] sm:$0xff] (!%p228_p2)   ;;  %v812_v7 = vld [vmem:[%s1070_s2 + $0x30] sm:$0xff] (!%p228_p2)  ;;  %v813_v8 = vld [vmem:[%s1070_s2 + $0x38] sm:$0xff] (!%p228_p2)  ;;  %s806_s11 = sshll.u32 (!%p228_p2), %s797_s22, 3 }
   0x8   : > { %863 = vmatprep.mubr.msk.bf16.mxu0 (!%p228_p2), %vm367_vm0, %v981_v3  ;;  %v912_v35 = vld [vmem:[%s1072_s4 + $0x8] sm:$0xff] (!%p228_p2)   ;;  %v913_v36 = vld [vmem:[%s1072_s4 + $0x10] sm:$0xff] (!%p228_p2)   ;;  %v914_v37 = vld [vmem:[%s1072_s4 + $0x18] sm:$0xff] (!%p228_p2)   ;;  %p280_p4 = scmp.lt.s32.totalorder (!%p228_p2), %s806_s11, 31 }
   0x9   : > { %v915_v38 = vld [vmem:[%s1071_s3] sm:$0xff] (!%p228_p2)  }
   0xa   : > { %871 = vmatprep.subr.bf16.mxu1 (!%p228_p2), %v915_v38 }
   0xb   : > { %872 = vmatpush3.bf16.msra.mxu1 (!%p228_p2), %v915_v38 }
   0xd   : > { %s1076_s23 = smov (!%p268_p3, %s802_s23), 15  ;;  %s1078_s11 = smov (!%p280_p4, %s806_s11), 31 }
   0xe   : > { %s803_s10 = sshll.u32 %s1076_s23, 3  ;;  %s807_s12 = sshll.u32 %s1078_s11, 3 }
   0xf   : > { %s271_s19 = scalar_lea.vmem %s1068_s0, %s803_s10  ;;  %s277_s24 = scalar_lea.vmem %s1069_s1, %s803_s10 }
  0x10   : > { %v292_v9 = vld [vmem:[%s271_s19] sm:$0xff]  ;;  %v293_v10 = vld [vmem:[%s271_s19 + $0x8] sm:$0xff]  ;;  %v294_v17 = vld [vmem:[%s271_s19 + $0x10] sm:$0xff]  ;;  %s283_s15 = scalar_lea.vmem %s1073_s5, %s807_s12  ;;  %s289_s17 = scalar_lea.vmem %s1074_s6, %s807_s12 }
  0x11   : > { %v296_v11 = vld [vmem:[%s277_s24] sm:$0xff]  ;;  %v297_v12 = vld [vmem:[%s277_s24 + $0x8] sm:$0xff]  ;;  %v309_v13 = vmul.f32 %v300_v0, %v292_v9  ;;  %v310_v14 = vmul.f32 %v301_v1, %v293_v10  ;;  %v323_v16 = vmul.f32 %v810_v2, %v292_v9  ;;  %v295_v18 = vld [vmem:[%s271_s19 + $0x18] sm:$0xff]  ;;  %v324_v20 = vmul.f32 %v811_v4, %v293_v10 }
  0x12   : > { %v313_v15 = vmul.f32 %v810_v2, %v296_v11  ;;  %v314_v19 = vmul.f32 %v811_v4, %v297_v12  ;;  %v327_v21 = vmul.f32 %v300_v0, %v296_v11  ;;  %v328_v22 = vmul.f32 %v301_v1, %v297_v12  ;;  %v298_v23 = vld [vmem:[%s277_s24 + $0x10] sm:$0xff]  ;;  %v299_v24 = vld [vmem:[%s277_s24 + $0x18] sm:$0xff] }
  0x13   : > { %v311_v26 = vmul.f32 %v302_v5, %v294_v17  ;;  %v312_v27 = vmul.f32 %v303_v6, %v295_v18  ;;  %v315_v28 = vmul.f32 %v812_v7, %v298_v23  ;;  %v316_v30 = vmul.f32 %v813_v8, %v299_v24 }
  0x14   : > { %v317_v25 = vsub.f32 %v309_v13, %v313_v15  ;;  %v318_v29 = vsub.f32 %v310_v14, %v314_v19  ;;  %v331_v39 = vadd.f32 %v327_v21, %v323_v16  ;;  %v332_v40 = vadd.f32 %v328_v22, %v324_v20 }
  0x15   : > { %v319_v31 = vsub.f32 %v311_v26, %v315_v28  ;;  %v320_v33 = vsub.f32 %v312_v27, %v316_v30  ;;  %v325_v42 = vmul.f32 %v812_v7, %v294_v17  ;;  %v326_v43 = vmul.f32 %v813_v8, %v295_v18 }
  0x16   : > { %v321_v32 = vpack.c.bf16 %v318_v29, %v317_v25  ;;  %v335_v41 = vpack.c.bf16 %v332_v40, %v331_v39  ;;  %v329_v44 = vmul.f32 %v302_v5, %v298_v23  ;;  %v330_v45 = vmul.f32 %v303_v6, %v299_v24 }
  0x17   : > { %v322_v34 = vpack.c.bf16 %v320_v33, %v319_v31 }
  0x18   : > { %859 = vmatprep.subr.bf16.mxu0 %v321_v32  ;;  %881 = vmatprep.subr.bf16.mxu1 %v335_v41  ;;  %v333_v48 = vadd.f32 %v329_v44, %v325_v42  ;;  %v334_v49 = vadd.f32 %v330_v45, %v326_v43 }
  0x19   : > { %860 = vmatpush3.bf16.msra.mxu0 %v321_v32 }
  0x1a   : > { %861 = vmatprep.subr.bf16.mxu0 %v322_v34  ;;  %v336_v54 = vpack.c.bf16 %v334_v49, %v333_v48 }
  0x1d   : > { %862 = vmatpush3.bf16.msra.mxu0 %v322_v34 }
  0x1e   : > { %893 = vmatprep.subr.bf16.mxu0 %v915_v38 }
  0x20   : > { %864 = vmatmul.mubr.msk.bf16.vlgmr.msra.gmra.mrb[0].mxu0 %vm367_vm0, %v912_v35 }
  0x21   : > { %867 = vmatprep.mubr.msk.bf16.mxu0 %vm367_vm0, %v913_v36  ;;  %894 = vmatpush3.bf16.msra.mxu0 %v915_v38 }
  0x28   : > { %868 = vmatmul.mubr.msk.bf16.gmra.mrb[4].mxu0 %vm367_vm0, %v914_v37 }
  0xf3   : > { %v865_v46 = vpop.f32.mrb[0].mxu0 }
  0xf4   : > { %v414_v47 = vpop.f32.mrb[1].mxu0 }
  0xf5   : > { %v866_v50 = vpop.f32.mrb[2].mxu0 }
  0xf6   : > { %v446_v51 = vpack.c.bf16 %v866_v50, %v865_v46  ;;  %v417_v52 = vpop.f32.mrb[3].mxu0 }
  0xf7   : > { %v445_v53 = vpack.c.bf16 %v417_v52, %v414_v47 }
  0xf9   : > { %873 = vmatprep.mubr.msk.bf16.mxu1 %vm455_vm1, %v445_v53 }
  0xfa   : > { %874 = vmatmul.mubr.msk.bf16.vlgmr.msra.gmra.mrb[0].mxu1 %vm455_vm1, %v446_v51 }
  0xfb   : > { %882 = vmatpush3.bf16.msra.mxu1 %v335_v41  ;;  %v869_v55 = vpop.f32.mrb[4].mxu0 }
  0xfc   : > { %v430_v56 = vpop.f32.mrb[5].mxu0  ;;  %883 = vmatprep.subr.bf16.mxu1 %v336_v54 }
  0xfd   : > { %v870_v57 = vpop.f32.mrb[6].mxu0 }
  0xfe   : > { %v448_v58 = vpack.c.bf16 %v870_v57, %v869_v55  ;;  %v433_v59 = vpop.f32.mrb[7].mxu0 }
  0xff   : > { %v447_v60 = vpack.c.bf16 %v433_v59, %v430_v56  ;;  %884 = vmatpush3.bf16.msra.mxu1 %v336_v54 }
 0x101   : > { %877 = vmatprep.mubr.msk.bf16.mxu1 %vm455_vm1, %v447_v60 }
 0x102   : > { %878 = vmatmul.mubr.msk.bf16.gmra.mrb[4].mxu1 %vm455_vm1, %v448_v58 }
 0x103   : > { %885 = vmatprep.mubr.msk.bf16.mxu1 %vm367_vm0, %v981_v3 }
 0x10a   : > { %886 = vmatmul.mubr.msk.bf16.vlgmr.msra.gmra.mrb[8].mxu1 %vm367_vm0, %v912_v35 }
 0x10b   : > { %889 = vmatprep.mubr.msk.bf16.mxu1 %vm367_vm0, %v913_v36 }
 0x112   : > { %890 = vmatmul.mubr.msk.bf16.gmra.mrb[12].mxu1 %vm367_vm0, %v914_v37 }
 0x1cd   : > { %v875_v61 = vpop.f32.mrb[0].mxu1 }
 0x1ce   : > { %535 = vst.msk [vmem:[%s283_s15 + $0x10] sm:$0xff] %vm367_vm0, %v875_v61  ;;  %v502_v62 = vpop.f32.mrb[1].mxu1 }
 0x1cf   : > { %533 = vst.msk [vmem:[%s283_s15] sm:$0xff] %vm367_vm0, %v502_v62  ;;  %v876_v63 = vpop.f32.mrb[2].mxu1 }
 0x1d0   : > { %536 = vst.msk [vmem:[%s283_s15 + $0x18] sm:$0xff] %vm367_vm0, %v876_v63  ;;  %v505_v0 = vpop.f32.mrb[3].mxu1 }
 0x1d1   : > { %534 = vst.msk [vmem:[%s283_s15 + $0x8] sm:$0xff] %vm367_vm0, %v505_v0 }
 0x1d5   : > { %v879_v1 = vpop.f32.mrb[4].mxu1 }
 0x1d6   : > { %539 = vst.msk [vmem:[%s283_s15 + $0x30] sm:$0xff] %vm367_vm0, %v879_v1  ;;  %v518_v2 = vpop.f32.mrb[5].mxu1 }
 0x1d7   : > { %537 = vst.msk [vmem:[%s283_s15 + $0x20] sm:$0xff] %vm367_vm0, %v518_v2  ;;  %v880_v3 = vpop.f32.mrb[6].mxu1 }
 0x1d8   : > { %540 = vst.msk [vmem:[%s283_s15 + $0x38] sm:$0xff] %vm367_vm0, %v880_v3  ;;  %v521_v4 = vpop.f32.mrb[7].mxu1 }
 0x1d9   : > { %538 = vst.msk [vmem:[%s283_s15 + $0x28] sm:$0xff] %vm367_vm0, %v521_v4 }
 0x1dd   : > { %v887_v5 = vpop.f32.mrb[8].mxu1 }
 0x1de   : > { %v575_v6 = vpop.f32.mrb[9].mxu1 }
 0x1df   : > { %v888_v7 = vpop.f32.mrb[10].mxu1 }
 0x1e0   : > { %v607_v8 = vpack.c.bf16 %v888_v7, %v887_v5  ;;  %v578_v9 = vpop.f32.mrb[11].mxu1 }
 0x1e1   : > { %v606_v10 = vpack.c.bf16 %v578_v9, %v575_v6 }
 0x1e3   : > { %895 = vmatprep.mubr.msk.bf16.mxu0 %vm455_vm1, %v606_v10 }
 0x1e4   : > { %896 = vmatmul.mubr.msk.bf16.vlgmr.msra.gmra.mrb[8].mxu0 %vm455_vm1, %v607_v8 }
 0x1e5   : > { %v891_v11 = vpop.f32.mrb[12].mxu1 }
 0x1e6   : > { %v591_v12 = vpop.f32.mrb[13].mxu1 }
 0x1e7   : > { %v892_v13 = vpop.f32.mrb[14].mxu1 }
 0x1e8   : > { %v609_v14 = vpack.c.bf16 %v892_v13, %v891_v11  ;;  %v594_v15 = vpop.f32.mrb[15].mxu1 }
 0x1e9   : > { %v608_v16 = vpack.c.bf16 %v594_v15, %v591_v12 }
 0x1eb   : > { %899 = vmatprep.mubr.msk.bf16.mxu0 %vm455_vm1, %v608_v16 }
 0x1ec   : > { %900 = vmatmul.mubr.msk.bf16.gmra.mrb[12].mxu0 %vm455_vm1, %v609_v14 }
 0x2b7   : > { %v897_v17 = vpop.f32.mrb[8].mxu0 }
 0x2b8   : > { %689 = vst.msk [vmem:[%s289_s17 + $0x10] sm:$0xff] %vm367_vm0, %v897_v17  ;;  %v656_v18 = vpop.f32.mrb[9].mxu0 }
 0x2b9   : > { %687 = vst.msk [vmem:[%s289_s17] sm:$0xff] %vm367_vm0, %v656_v18  ;;  %v898_v19 = vpop.f32.mrb[10].mxu0 }
 0x2ba   : > { %690 = vst.msk [vmem:[%s289_s17 + $0x18] sm:$0xff] %vm367_vm0, %v898_v19  ;;  %v659_v20 = vpop.f32.mrb[11].mxu0 }
 0x2bb   : > { %688 = vst.msk [vmem:[%s289_s17 + $0x8] sm:$0xff] %vm367_vm0, %v659_v20 }
 0x2bf   : > { %v901_v21 = vpop.f32.mrb[12].mxu0 }
 0x2c0   : > { %693 = vst.msk [vmem:[%s289_s17 + $0x30] sm:$0xff] %vm367_vm0, %v901_v21  ;;  %v672_v22 = vpop.f32.mrb[13].mxu0 }
 0x2c1   : > { %691 = vst.msk [vmem:[%s289_s17 + $0x20] sm:$0xff] %vm367_vm0, %v672_v22  ;;  %v902_v23 = vpop.f32.mrb[14].mxu0 }
 0x2c2   : > { %694 = vst.msk [vmem:[%s289_s17 + $0x38] sm:$0xff] %vm367_vm0, %v902_v23  ;;  %v675_v24 = vpop.f32.mrb[15].mxu0 }
 0x2c3   : > { %692 = vst.msk [vmem:[%s289_s17 + $0x28] sm:$0xff] %vm367_vm0, %v675_v24 }
 0x2c4 PF: > { %s17_s21 = sadd.s32 1, %s922_s21  }
 0x2c5   : > { %p14_p5 = scmp.ge.s32.totalorder %s17_s21, 6  }
 0x2c7   :  { %16 = sbr.rel (!%p14_p5) target bundleno = 1 (0x1), region = 86 }

// kernel: tpu_custom_call.1
= control target key start
LH: loop header
LB: loop body
LE: loop exit
PB: predicated region body
PF: predicated region fallthrough
CT: control target
= control target key end

     0   :  { %s959_s21 = smov 0   ;;  %s1068_s0 = inlined_call_operand.vmem [shape: f32[128,16], index: 0, kind: input, shape index: {}]   ;;  %s1069_s1 = inlined_call_operand.vmem [shape: f32[128,16], index: 1, kind: input, shape index: {}]   ;;  %s1070_s2 = inlined_call_operand.vmem [shape: f32[2,32,16], index: 2, kind: input, shape index: {}]   ;;  %s1071_s3 = inlined_call_operand.vmem [shape: bf16[16,32], index: 3, kind: input, shape index: {}]   ;;  %s1072_s4 = inlined_call_operand.vmem [shape: bf16[64,32], index: 4, kind: input, shape index: {}]   ;;  %s1073_s5 = inlined_call_operand.vmem [shape: f32[256,32], index: 5, kind: output, shape index: {0}]   ;;  %s1074_s6 = inlined_call_operand.vmem [shape: f32[256,32], index: 6, kind: output, shape index: {1}]  }
   0x1 LB: > { %s797_s22 = sadd.s32 4294967295, %s922_s21   ;;  %p801_p0 = scmp.ge.s32.totalorder %s922_s21, 1  ;;  %s922_s21 = sphi %s959_s21, %s17_s21  }
   0x2   : > { %p227_p1 = scmp.lt.s32.totalorder %s922_s21, 5 }
   0x4   : > { %p228_p2 = pnand %p801_p0, %p227_p1 }
   0x5   : > { %s802_s23 = sshll.u32 (!%p228_p2), %s797_s22, 2  ;;  %vm367_vm0 = vcmask (!%p228_p2), 261120   ;;  %v300_v0 = vld [vmem:[%s1070_s2] sm:$0xff] (!%p228_p2)  ;;  %v301_v1 = vld [vmem:[%s1070_s2 + $0x8] sm:$0xff] (!%p228_p2)  ;;  %v302_v5 = vld [vmem:[%s1070_s2 + $0x10] sm:$0xff] (!%p228_p2)  ;;  %vm455_vm1 = vcmask (!%p228_p2), 130048  }
   0x6   : > { %231 = sbr.rel (%p228_p2) target bundleno = 708 (0x2c4), region = 40  ;;  %p268_p3 = scmp.lt.s32.totalorder (!%p228_p2), %s802_s23, 15  ;;  %v810_v2 = vld [vmem:[%s1070_s2 + $0x20] sm:$0xff] (!%p228_p2)  ;;  %v811_v4 = vld [vmem:[%s1070_s2 + $0x28] sm:$0xff] (!%p228_p2)  ;;  %v303_v6 = vld [vmem:[%s1070_s2 + $0x18] sm:$0xff] (!%p228_p2) }
   0x7   : > { %v981_v3 = vld [vmem:[%s1072_s4] sm:$0xff] (!%p228_p2)   ;;  %v812_v7 = vld [vmem:[%s1070_s2 + $0x30] sm:$0xff] (!%p228_p2)  ;;  %v813_v8 = vld [vmem:[%s1070_s2 + $0x38] sm:$0xff] (!%p228_p2)  ;;  %s806_s11 = sshll.u32 (!%p228_p2), %s797_s22, 3 }
   0x8   : > { %863 = vmatprep.mubr.msk.bf16.mxu0 (!%p228_p2), %vm367_vm0, %v981_v3  ;;  %v912_v35 = vld [vmem:[%s1072_s4 + $0x8] sm:$0xff] (!%p228_p2)   ;;  %v913_v36 = vld [vmem:[%s1072_s4 + $0x10] sm:$0xff] (!%p228_p2)   ;;  %v914_v37 = vld [vmem:[%s1072_s4 + $0x18] sm:$0xff] (!%p228_p2)   ;;  %p280_p4 = scmp.lt.s32.totalorder (!%p228_p2), %s806_s11, 31 }
   0x9   : > { %v915_v38 = vld [vmem:[%s1071_s3] sm:$0xff] (!%p228_p2)  }
   0xa   : > { %871 = vmatprep.subr.bf16.mxu1 (!%p228_p2), %v915_v38 }
   0xb   : > { %872 = vmatpush3.bf16.msra.mxu1 (!%p228_p2), %v915_v38 }
   0xd   : > { %s1076_s23 = smov (!%p268_p3, %s802_s23), 15  ;;  %s1078_s11 = smov (!%p280_p4, %s806_s11), 31 }
   0xe   : > { %s803_s10 = sshll.u32 %s1076_s23, 3  ;;  %s807_s12 = sshll.u32 %s1078_s11, 3 }
   0xf   : > { %s271_s19 = scalar_lea.vmem %s1068_s0, %s803_s10  ;;  %s277_s24 = scalar_lea.vmem %s1069_s1, %s803_s10 }
  0x10   : > { %v292_v9 = vld [vmem:[%s271_s19] sm:$0xff]  ;;  %v293_v10 = vld [vmem:[%s271_s19 + $0x8] sm:$0xff]  ;;  %v294_v17 = vld [vmem:[%s271_s19 + $0x10] sm:$0xff]  ;;  %s283_s15 = scalar_lea.vmem %s1073_s5, %s807_s12  ;;  %s289_s17 = scalar_lea.vmem %s1074_s6, %s807_s12 }
  0x11   : > { %v296_v11 = vld [vmem:[%s277_s24] sm:$0xff]  ;;  %v297_v12 = vld [vmem:[%s277_s24 + $0x8] sm:$0xff]  ;;  %v309_v13 = vmul.f32 %v300_v0, %v292_v9  ;;  %v310_v14 = vmul.f32 %v301_v1, %v293_v10  ;;  %v323_v16 = vmul.f32 %v810_v2, %v292_v9  ;;  %v295_v18 = vld [vmem:[%s271_s19 + $0x18] sm:$0xff]  ;;  %v324_v20 = vmul.f32 %v811_v4, %v293_v10 }
  0x12   : > { %v313_v15 = vmul.f32 %v810_v2, %v296_v11  ;;  %v314_v19 = vmul.f32 %v811_v4, %v297_v12  ;;  %v327_v21 = vmul.f32 %v300_v0, %v296_v11  ;;  %v328_v22 = vmul.f32 %v301_v1, %v297_v12  ;;  %v298_v23 = vld [vmem:[%s277_s24 + $0x10] sm:$0xff]  ;;  %v299_v24 = vld [vmem:[%s277_s24 + $0x18] sm:$0xff] }
  0x13   : > { %v311_v26 = vmul.f32 %v302_v5, %v294_v17  ;;  %v312_v27 = vmul.f32 %v303_v6, %v295_v18  ;;  %v315_v28 = vmul.f32 %v812_v7, %v298_v23  ;;  %v316_v30 = vmul.f32 %v813_v8, %v299_v24 }
  0x14   : > { %v317_v25 = vsub.f32 %v309_v13, %v313_v15  ;;  %v318_v29 = vsub.f32 %v310_v14, %v314_v19  ;;  %v331_v39 = vadd.f32 %v327_v21, %v323_v16  ;;  %v332_v40 = vadd.f32 %v328_v22, %v324_v20 }
  0x15   : > { %v319_v31 = vsub.f32 %v311_v26, %v315_v28  ;;  %v320_v33 = vsub.f32 %v312_v27, %v316_v30  ;;  %v325_v42 = vmul.f32 %v812_v7, %v294_v17  ;;  %v326_v43 = vmul.f32 %v813_v8, %v295_v18 }
  0x16   : > { %v321_v32 = vpack.c.bf16 %v318_v29, %v317_v25  ;;  %v335_v41 = vpack.c.bf16 %v332_v40, %v331_v39  ;;  %v329_v44 = vmul.f32 %v302_v5, %v298_v23  ;;  %v330_v45 = vmul.f32 %v303_v6, %v299_v24 }
  0x17   : > { %v322_v34 = vpack.c.bf16 %v320_v33, %v319_v31 }
  0x18   : > { %859 = vmatprep.subr.bf16.mxu0 %v321_v32  ;;  %881 = vmatprep.subr.bf16.mxu1 %v335_v41  ;;  %v333_v48 = vadd.f32 %v329_v44, %v325_v42  ;;  %v334_v49 = vadd.f32 %v330_v45, %v326_v43 }
  0x19   : > { %860 = vmatpush3.bf16.msra.mxu0 %v321_v32 }
  0x1a   : > { %861 = vmatprep.subr.bf16.mxu0 %v322_v34  ;;  %v336_v54 = vpack.c.bf16 %v334_v49, %v333_v48 }
  0x1d   : > { %862 = vmatpush3.bf16.msra.mxu0 %v322_v34 }
  0x1e   : > { %893 = vmatprep.subr.bf16.mxu0 %v915_v38 }
  0x20   : > { %864 = vmatmul.mubr.msk.bf16.vlgmr.msra.gmra.mrb[0].mxu0 %vm367_vm0, %v912_v35 }
  0x21   : > { %867 = vmatprep.mubr.msk.bf16.mxu0 %vm367_vm0, %v913_v36  ;;  %894 = vmatpush3.bf16.msra.mxu0 %v915_v38 }
  0x28   : > { %868 = vmatmul.mubr.msk.bf16.gmra.mrb[4].mxu0 %vm367_vm0, %v914_v37 }
  0xf3   : > { %v865_v46 = vpop.f32.mrb[0].mxu0 }
  0xf4   : > { %v414_v47 = vpop.f32.mrb[1].mxu0 }
  0xf5   : > { %v866_v50 = vpop.f32.mrb[2].mxu0 }
  0xf6   : > { %v446_v51 = vpack.c.bf16 %v866_v50, %v865_v46  ;;  %v417_v52 = vpop.f32.mrb[3].mxu0 }
  0xf7   : > { %v445_v53 = vpack.c.bf16 %v417_v52, %v414_v47 }
  0xf9   : > { %873 = vmatprep.mubr.msk.bf16.mxu1 %vm455_vm1, %v445_v53 }
  0xfa   : > { %874 = vmatmul.mubr.msk.bf16.vlgmr.msra.gmra.mrb[0].mxu1 %vm455_vm1, %v446_v51 }
  0xfb   : > { %882 = vmatpush3.bf16.msra.mxu1 %v335_v41  ;;  %v869_v55 = vpop.f32.mrb[4].mxu0 }
  0xfc   : > { %v430_v56 = vpop.f32.mrb[5].mxu0  ;;  %883 = vmatprep.subr.bf16.mxu1 %v336_v54 }
  0xfd   : > { %v870_v57 = vpop.f32.mrb[6].mxu0 }
  0xfe   : > { %v448_v58 = vpack.c.bf16 %v870_v57, %v869_v55  ;;  %v433_v59 = vpop.f32.mrb[7].mxu0 }
  0xff   : > { %v447_v60 = vpack.c.bf16 %v433_v59, %v430_v56  ;;  %884 = vmatpush3.bf16.msra.mxu1 %v336_v54 }
 0x101   : > { %877 = vmatprep.mubr.msk.bf16.mxu1 %vm455_vm1, %v447_v60 }
 0x102   : > { %878 = vmatmul.mubr.msk.bf16.gmra.mrb[4].mxu1 %vm455_vm1, %v448_v58 }
 0x103   : > { %885 = vmatprep.mubr.msk.bf16.mxu1 %vm367_vm0, %v981_v3 }
 0x10a   : > { %886 = vmatmul.mubr.msk.bf16.vlgmr.msra.gmra.mrb[8].mxu1 %vm367_vm0, %v912_v35 }
 0x10b   : > { %889 = vmatprep.mubr.msk.bf16.mxu1 %vm367_vm0, %v913_v36 }
 0x112   : > { %890 = vmatmul.mubr.msk.bf16.gmra.mrb[12].mxu1 %vm367_vm0, %v914_v37 }
 0x1cd   : > { %v875_v61 = vpop.f32.mrb[0].mxu1 }
 0x1ce   : > { %535 = vst.msk [vmem:[%s283_s15 + $0x10] sm:$0xff] %vm367_vm0, %v875_v61  ;;  %v502_v62 = vpop.f32.mrb[1].mxu1 }
 0x1cf   : > { %533 = vst.msk [vmem:[%s283_s15] sm:$0xff] %vm367_vm0, %v502_v62  ;;  %v876_v63 = vpop.f32.mrb[2].mxu1 }
 0x1d0   : > { %536 = vst.msk [vmem:[%s283_s15 + $0x18] sm:$0xff] %vm367_vm0, %v876_v63  ;;  %v505_v0 = vpop.f32.mrb[3].mxu1 }
 0x1d1   : > { %534 = vst.msk [vmem:[%s283_s15 + $0x8] sm:$0xff] %vm367_vm0, %v505_v0 }
 0x1d5   : > { %v879_v1 = vpop.f32.mrb[4].mxu1 }
 0x1d6   : > { %539 = vst.msk [vmem:[%s283_s15 + $0x30] sm:$0xff] %vm367_vm0, %v879_v1  ;;  %v518_v2 = vpop.f32.mrb[5].mxu1 }
 0x1d7   : > { %537 = vst.msk [vmem:[%s283_s15 + $0x20] sm:$0xff] %vm367_vm0, %v518_v2  ;;  %v880_v3 = vpop.f32.mrb[6].mxu1 }
 0x1d8   : > { %540 = vst.msk [vmem:[%s283_s15 + $0x38] sm:$0xff] %vm367_vm0, %v880_v3  ;;  %v521_v4 = vpop.f32.mrb[7].mxu1 }
 0x1d9   : > { %538 = vst.msk [vmem:[%s283_s15 + $0x28] sm:$0xff] %vm367_vm0, %v521_v4 }
 0x1dd   : > { %v887_v5 = vpop.f32.mrb[8].mxu1 }
 0x1de   : > { %v575_v6 = vpop.f32.mrb[9].mxu1 }
 0x1df   : > { %v888_v7 = vpop.f32.mrb[10].mxu1 }
 0x1e0   : > { %v607_v8 = vpack.c.bf16 %v888_v7, %v887_v5  ;;  %v578_v9 = vpop.f32.mrb[11].mxu1 }
 0x1e1   : > { %v606_v10 = vpack.c.bf16 %v578_v9, %v575_v6 }
 0x1e3   : > { %895 = vmatprep.mubr.msk.bf16.mxu0 %vm455_vm1, %v606_v10 }
 0x1e4   : > { %896 = vmatmul.mubr.msk.bf16.vlgmr.msra.gmra.mrb[8].mxu0 %vm455_vm1, %v607_v8 }
 0x1e5   : > { %v891_v11 = vpop.f32.mrb[12].mxu1 }
 0x1e6   : > { %v591_v12 = vpop.f32.mrb[13].mxu1 }
 0x1e7   : > { %v892_v13 = vpop.f32.mrb[14].mxu1 }
 0x1e8   : > { %v609_v14 = vpack.c.bf16 %v892_v13, %v891_v11  ;;  %v594_v15 = vpop.f32.mrb[15].mxu1 }
 0x1e9   : > { %v608_v16 = vpack.c.bf16 %v594_v15, %v591_v12 }
 0x1eb   : > { %899 = vmatprep.mubr.msk.bf16.mxu0 %vm455_vm1, %v608_v16 }
 0x1ec   : > { %900 = vmatmul.mubr.msk.bf16.gmra.mrb[12].mxu0 %vm455_vm1, %v609_v14 }
 0x2b7   : > { %v897_v17 = vpop.f32.mrb[8].mxu0 }
 0x2b8   : > { %689 = vst.msk [vmem:[%s289_s17 + $0x10] sm:$0xff] %vm367_vm0, %v897_v17  ;;  %v656_v18 = vpop.f32.mrb[9].mxu0 }
 0x2b9   : > { %687 = vst.msk [vmem:[%s289_s17] sm:$0xff] %vm367_vm0, %v656_v18  ;;  %v898_v19 = vpop.f32.mrb[10].mxu0 }
 0x2ba   : > { %690 = vst.msk [vmem:[%s289_s17 + $0x18] sm:$0xff] %vm367_vm0, %v898_v19  ;;  %v659_v20 = vpop.f32.mrb[11].mxu0 }
 0x2bb   : > { %688 = vst.msk [vmem:[%s289_s17 + $0x8] sm:$0xff] %vm367_vm0, %v659_v20 }
 0x2bf   : > { %v901_v21 = vpop.f32.mrb[12].mxu0 }
 0x2c0   : > { %693 = vst.msk [vmem:[%s289_s17 + $0x30] sm:$0xff] %vm367_vm0, %v901_v21  ;;  %v672_v22 = vpop.f32.mrb[13].mxu0 }
 0x2c1   : > { %691 = vst.msk [vmem:[%s289_s17 + $0x20] sm:$0xff] %vm367_vm0, %v672_v22  ;;  %v902_v23 = vpop.f32.mrb[14].mxu0 }
 0x2c2   : > { %694 = vst.msk [vmem:[%s289_s17 + $0x38] sm:$0xff] %vm367_vm0, %v902_v23  ;;  %v675_v24 = vpop.f32.mrb[15].mxu0 }
 0x2c3   : > { %692 = vst.msk [vmem:[%s289_s17 + $0x28] sm:$0xff] %vm367_vm0, %v675_v24 }
 0x2c4 PF: > { %s17_s21 = sadd.s32 1, %s922_s21  }
 0x2c5   : > { %p14_p5 = scmp.ge.s32.totalorder %s17_s21, 6  }
 0x2c7   :  { %16 = sbr.rel (!%p14_p5) target bundleno = 1 (0x1), region = 86 }

</bundles_post_ra>
